<compile_context>
chip_gen: v5e
topology: v5e:2x2
jax: 0.10.0
libtpu: 0.0.40
codegen_flags: <defaults>
</compile_context>

<pallas_src>
import jax
import jax.numpy as jnp
from jax.experimental import pallas as pl
from jax.experimental.pallas import tpu as pltpu


def _round_up(n, m):
    return ((n + m - 1) // m) * m


def value_net_kernel(x_ref, w1_ref, b1_ref, w2_ref, b2_ref, o_ref, mx_ref):
    s = pl.program_id(1)

    @pl.when(s == 0)
    def _():
        mx_ref[...] = jnp.full(mx_ref.shape, -jnp.inf, dtype=mx_ref.dtype)

    # Running max over the sequence axis for this (TB, TS, E) slab.
    mx_ref[...] = jnp.maximum(mx_ref[...], jnp.max(x_ref[...], axis=1))

    @pl.when(s == pl.num_programs(1) - 1)
    def _():
        xm = mx_ref[...]                                              # (TB, E)
        # Linear(E, E) + ReLU on the MXU (f32 accumulate).
        h = jnp.dot(xm, w1_ref[...], preferred_element_type=jnp.float32)
        h = jnp.maximum(h + b1_ref[...], 0.0)                         # (TB, E)
        # Linear(E, 1): VPU multiply + lane reduction (w2 is a (1, E) row).
        y = jnp.sum(h * w2_ref[...], axis=-1, keepdims=True) + b2_ref[0]
        o_ref[...] = jnp.tanh(y).astype(o_ref.dtype)                  # (TB, 1)


def _choose_tiles(B, S, E):
    # Batch tile: full (rounded to 8 sublanes) when small, else 128 rows.
    tb = 128 if B > 128 else max(_round_up(B, 8), 8)
    # Sequence tile: target ~4 MiB per streamed x slab (double-buffered ~8 MiB).
    max_elems = (4 * 1024 * 1024) // 4
    ts_cap = max(max_elems // max(tb * E, 1), 8)
    ts = S if S <= ts_cap else (ts_cap // 8) * 8
    return tb, max(ts, 1)


def custom_value_net(x, w1, b1, w2, b2):
    """x: (B, S, E) f32; returns (B, 1) f32."""
    B, S, E = x.shape
    w1 = w1.reshape(E, E).astype(jnp.float32)
    b1 = b1.reshape(1, E).astype(jnp.float32)
    w2_row = w2.reshape(1, E).astype(jnp.float32)   # (E, 1) column -> (1, E) row
    b2 = b2.reshape(1).astype(jnp.float32)          # scalar -> SMEM

    tb, ts = _choose_tiles(B, S, E)
    B_pad = _round_up(B, tb)
    S_pad = _round_up(S, ts)

    # Pad S with the most negative f32 (does not perturb the max); pad B with 0
    # (padded batch rows are sliced off the output).
    if S_pad != S:
        x = jnp.pad(x, ((0, 0), (0, S_pad - S), (0, 0)),
                    constant_values=float(jnp.finfo(x.dtype).min))
    if B_pad != B:
        x = jnp.pad(x, ((0, B_pad - B), (0, 0), (0, 0)))

    n_b = B_pad // tb
    n_s = S_pad // ts

    # VMEM budget: double-buffered x slabs + resident weights + scratch + slack.
    vmem_bytes = (2 * tb * ts * E * 4      # x stream (double buffered)
                  + 2 * E * E * 4          # w1
                  + 4 * E * 4              # b1, w2 row
                  + 2 * tb * 4             # output
                  + tb * E * 4             # running-max scratch
                  + (4 << 20))             # headroom
    vmem_limit = int(min(max(vmem_bytes, 32 << 20), 64 << 20))

    cost = pl.CostEstimate(
        flops=int(2 * B_pad * E * E + 3 * B_pad * E + B_pad * S_pad * E),
        transcendentals=int(B_pad),
        bytes_accessed=int(4 * (B_pad * S_pad * E + E * E + 2 * E + 1 + B_pad)),
    )

    out = pl.pallas_call(
        value_net_kernel,
        out_shape=jax.ShapeDtypeStruct((B_pad, 1), jnp.float32),
        grid_spec=pltpu.PrefetchScalarGridSpec(
            num_scalar_prefetch=0,
            grid=(n_b, n_s),
            in_specs=[
                pl.BlockSpec((tb, ts, E), lambda b, s: (b, s, 0)),    # x stream
                pl.BlockSpec((E, E), lambda b, s: (0, 0)),            # w1 (resident)
                pl.BlockSpec((1, E), lambda b, s: (0, 0)),            # b1
                pl.BlockSpec((1, E), lambda b, s: (0, 0)),            # w2 row
                pl.BlockSpec(memory_space=pltpu.MemorySpace.SMEM),    # b2 scalar
            ],
            out_specs=pl.BlockSpec((tb, 1), lambda b, s: (b, 0)),
            scratch_shapes=[pltpu.VMEM((tb, E), jnp.float32)],        # running max
        ),
        compiler_params=pltpu.CompilerParams(
            dimension_semantics=("parallel", "arbitrary"),
            vmem_limit_bytes=vmem_limit,
        ),
        cost_estimate=cost,
    )(x, w1, b1, w2_row, b2)

    return out[:B]


def init_params(key, embed_dim):
    """Deterministic init mimicking PyTorch nn.Linear default:
    U(-1/sqrt(fan_in), 1/sqrt(fan_in)) for both weight and bias."""
    k1, k2, k3, k4 = jax.random.split(key, 4)
    bound = 1.0 / jnp.sqrt(embed_dim)
    w1 = jax.random.uniform(k1, (embed_dim, embed_dim), jnp.float32, -bound, bound)
    b1 = jax.random.uniform(k2, (1, embed_dim), jnp.float32, -bound, bound)
    w2 = jax.random.uniform(k3, (embed_dim, 1), jnp.float32, -bound, bound)
    b2 = jax.random.uniform(k4, (1, 1), jnp.float32, -bound, bound)
    return w1, b1, w2, b2


def reference(x, w1, b1, w2, b2):
    xm = jnp.max(x, axis=1)
    h = jnp.maximum(xm @ w1 + b1, 0.0)
    return jnp.tanh(h @ w2 + b2)


if __name__ == "__main__":
    B, S, E = 2, 8, 32
    key = jax.random.PRNGKey(0)
    kx, kp = jax.random.split(key)
    x = jax.random.normal(kx, (B, S, E), jnp.float32)
    w1, b1, w2, b2 = init_params(kp, E)

    out = custom_value_net(x, w1, b1, w2, b2)
    out = jax.block_until_ready(out)

    ref = reference(x, w1, b1, w2, b2)
    assert out.shape == (B, 1), out.shape
    assert jnp.allclose(out, ref, atol=1e-5, rtol=1e-5), (out, ref)

    print("KERNEL_OK")
</pallas_src>

<mosaic_0001>
module attributes {stable_mosaic.version = 11 : i64} {
  func.func @value_net_kernel(%arg0: i32, %arg1: i32, %arg2: memref<8x8x32xf32, #tpu.memory_space<vmem>>, %arg3: memref<32x32xf32, #tpu.memory_space<vmem>>, %arg4: memref<1x32xf32, #tpu.memory_space<vmem>>, %arg5: memref<1x32xf32, #tpu.memory_space<vmem>>, %arg6: memref<1xf32, #tpu.memory_space<smem>>, %arg7: memref<8x1xf32, #tpu.memory_space<vmem>>, %arg8: memref<8x32xf32, #tpu.memory_space<vmem>>) attributes {dimension_semantics = [#tpu.dimension_semantics<parallel>, #tpu.dimension_semantics<arbitrary>], iteration_bounds = array<i64: 1, 1>, scalar_prefetch = 0 : i64, scratch_operands = 1 : i64, tpu.core_type = #tpu.core_type<tc>, window_params = [{transform_indices = @transform_0, window_bounds = array<i64: 8, 8, 32>}, {pipeline_mode = #tpu.pipeline_mode<synchronous>, transform_indices = @transform_1, window_bounds = array<i64: 32, 32>}, {pipeline_mode = #tpu.pipeline_mode<synchronous>, transform_indices = @transform_2, window_bounds = array<i64: 1, 32>}, {pipeline_mode = #tpu.pipeline_mode<synchronous>, transform_indices = @transform_3, window_bounds = array<i64: 1, 32>}, {transform_indices = @transform_4, window_bounds = array<i64: 1>}, {transform_indices = @transform_5, window_bounds = array<i64: 8, 1>}]} {
    %c0_i32 = arith.constant 0 : i32
    %0 = arith.cmpi eq, %arg1, %c0_i32 : i32
    %1 = arith.extui %0 : i1 to i32
    %c0_i32_0 = arith.constant 0 : i32
    %2 = arith.cmpi ne, %1, %c0_i32_0 : i32
    scf.if %2 {
      %cst_9 = arith.constant 0xFF800000 : f32
      %11 = vector.broadcast %cst_9 : f32 to vector<8x32xf32>
      %c0_10 = arith.constant 0 : index
      %c0_11 = arith.constant 0 : index
      %12 = vector.load %arg8[%c0_10, %c0_11] : memref<8x32xf32, #tpu.memory_space<vmem>>, vector<8x32xf32>
      tpu.vector_store %arg8[%c0_10, %c0_11], %11 {strides = array<i32>} : memref<8x32xf32, #tpu.memory_space<vmem>>, vector<8x32xf32>,
    } else {
    }
    %c0 = arith.constant 0 : index
    %c0_1 = arith.constant 0 : index
    %3 = vector.load %arg8[%c0, %c0_1] : memref<8x32xf32, #tpu.memory_space<vmem>>, vector<8x32xf32>
    %c0_2 = arith.constant 0 : index
    %c0_3 = arith.constant 0 : index
    %c0_4 = arith.constant 0 : index
    %4 = vector.load %arg2[%c0_2, %c0_3, %c0_4] : memref<8x8x32xf32, #tpu.memory_space<vmem>>, vector<8x8x32xf32>
    %cst = arith.constant dense<0xFF800000> : vector<8x32xf32>
    %5 = vector.multi_reduction <maximumf>, %4, %cst [1] : vector<8x8x32xf32> to vector<8x32xf32>
    %6 = arith.maximumf %3, %5 : vector<8x32xf32>
    %c0_5 = arith.constant 0 : index
    %c0_6 = arith.constant 0 : index
    %7 = vector.load %arg8[%c0_5, %c0_6] : memref<8x32xf32, #tpu.memory_space<vmem>>, vector<8x32xf32>
    tpu.vector_store %arg8[%c0_5, %c0_6], %6 {strides = array<i32>} : memref<8x32xf32, #tpu.memory_space<vmem>>, vector<8x32xf32>,
    %c0_i32_7 = arith.constant 0 : i32
    %8 = arith.cmpi eq, %arg1, %c0_i32_7 : i32
    %9 = arith.extui %8 : i1 to i32
    %c0_i32_8 = arith.constant 0 : i32
    %10 = arith.cmpi ne, %9, %c0_i32_8 : i32
    scf.if %10 {
      %c0_9 = arith.constant 0 : index
      %c0_10 = arith.constant 0 : index
      %11 = vector.load %arg8[%c0_9, %c0_10] : memref<8x32xf32, #tpu.memory_space<vmem>>, vector<8x32xf32>
      %c0_11 = arith.constant 0 : index
      %c0_12 = arith.constant 0 : index
      %12 = vector.load %arg3[%c0_11, %c0_12] : memref<32x32xf32, #tpu.memory_space<vmem>>, vector<32x32xf32>
      %cst_13 = arith.constant dense<0.000000e+00> : vector<8x32xf32>
      %13 = tpu.matmul %11, %12, %cst_13 {dimension_numbers = #tpu.dot_dimension_numbers<[1], [0], [0], [1], [0, 0, 1, 1], [], []>} : vector<8x32xf32>, vector<32x32xf32>, vector<8x32xf32> -> vector<8x32xf32>
      %c0_14 = arith.constant 0 : index
      %c0_15 = arith.constant 0 : index
      %14 = vector.load %arg4[%c0_14, %c0_15] : memref<1x32xf32, #tpu.memory_space<vmem>>, vector<1x32xf32>
      %15 = vector.broadcast %14 : vector<1x32xf32> to vector<8x32xf32>
      %16 = arith.addf %13, %15 : vector<8x32xf32>
      %cst_16 = arith.constant 0.000000e+00 : f32
      %17 = vector.broadcast %cst_16 : f32 to vector<8x32xf32>
      %18 = arith.maximumf %16, %17 : vector<8x32xf32>
      %c0_17 = arith.constant 0 : index
      %c0_18 = arith.constant 0 : index
      %19 = vector.load %arg5[%c0_17, %c0_18] : memref<1x32xf32, #tpu.memory_space<vmem>>, vector<1x32xf32>
      %20 = vector.broadcast %19 : vector<1x32xf32> to vector<8x32xf32>
      %21 = arith.mulf %18, %20 : vector<8x32xf32>
      %cst_19 = arith.constant dense<0.000000e+00> : vector<8xf32>
      %22 = vector.multi_reduction <add>, %21, %cst_19 [1] : vector<8x32xf32> to vector<8xf32>
      %23 = vector.shape_cast %22 : vector<8xf32> to vector<8x1xf32>
      %c0_20 = arith.constant 0 : index
      %24 = memref.load %arg6[%c0_20] : memref<1xf32, #tpu.memory_space<smem>>
      %25 = vector.broadcast %24 : f32 to vector<8x1xf32>
      %26 = arith.addf %23, %25 : vector<8x1xf32>
      %27 = math.tanh %26 : vector<8x1xf32>
      %c0_21 = arith.constant 0 : index
      %c0_22 = arith.constant 0 : index
      %28 = vector.load %arg7[%c0_21, %c0_22] : memref<8x1xf32, #tpu.memory_space<vmem>>, vector<8x1xf32>
      tpu.vector_store %arg7[%c0_21, %c0_22], %27 {strides = array<i32>} : memref<8x1xf32, #tpu.memory_space<vmem>>, vector<8x1xf32>,
    } else {
    }
    return
  }
  func.func @transform_0(%arg0: i32, %arg1: i32) -> (i32, i32, i32) {
    %c0_i32 = arith.constant 0 : i32
    %c0_i32_0 = arith.constant 0 : i32
    return %arg0, %arg1, %c0_i32 : i32, i32, i32
  }
  func.func @transform_1(%arg0: i32, %arg1: i32) -> (i32, i32) {
    %c0_i32 = arith.constant 0 : i32
    %c0_i32_0 = arith.constant 0 : i32
    %c0_i32_1 = arith.constant 0 : i32
    return %c0_i32, %c0_i32_0 : i32, i32
  }
  func.func @transform_2(%arg0: i32, %arg1: i32) -> (i32, i32) {
    %c0_i32 = arith.constant 0 : i32
    %c0_i32_0 = arith.constant 0 : i32
    %c0_i32_1 = arith.constant 0 : i32
    return %c0_i32, %c0_i32_0 : i32, i32
  }
  func.func @transform_3(%arg0: i32, %arg1: i32) -> (i32, i32) {
    %c0_i32 = arith.constant 0 : i32
    %c0_i32_0 = arith.constant 0 : i32
    %c0_i32_1 = arith.constant 0 : i32
    return %c0_i32, %c0_i32_0 : i32, i32
  }
  func.func @transform_4(%arg0: i32, %arg1: i32) -> i32 {
    %c0_i32 = arith.constant 0 : i32
    %c0_i32_0 = arith.constant 0 : i32
    return %c0_i32 : i32
  }
  func.func @transform_5(%arg0: i32, %arg1: i32) -> (i32, i32) {
    %c0_i32 = arith.constant 0 : i32
    %c0_i32_0 = arith.constant 0 : i32
    return %arg0, %c0_i32 : i32, i32
  }
}

</mosaic_0001>

<bundles_post_ra>
// kernel: tpu_custom_call.1
= control target key start
LH: loop header
LB: loop body
LE: loop exit
PB: predicated region body
PF: predicated region fallthrough
CT: control target
= control target key end

     0   :  { %11 = vsyncpa [#allocation5], 0  ;;  %s335_s0 = inlined_call_operand.hbm [shape: f32[8,8,32], index: 0, kind: input, shape index: {}]   ;;  %s336_s1 = inlined_call_operand.hbm [shape: f32[32,32], index: 1, kind: input, shape index: {}]   ;;  %s337_s2 = inlined_call_operand.vmem [shape: f32[1,32], index: 2, kind: input, shape index: {}]   ;;  %s338_s3 = inlined_call_operand.vmem [shape: f32[1,32], index: 3, kind: input, shape index: {}]   ;;  %s339_s4 = inlined_call_operand.<no memory space> [shape: f32[1], index: 4, kind: input, shape index: {}]   ;;  %s340_s5 = inlined_call_operand.vmem [shape: f32[8,1], index: 5, kind: output, shape index: {}]  }
   0x1   :  { %s17_s20 = sshll.u32 %s335_s0, 4  ;;  %s18_s20 = int_to_ptr.hbm [resolvable:$true] %s17_s20 }
   0x2   :  { %12 = vsyncpa [#allocation7], 0  ;;  %s268_s21 = smov [#allocation4]   ;;  %s30_s25 = sshll.u32 %s336_s1, 4  ;;  %s31_s25 = int_to_ptr.hbm [resolvable:$true] %s30_s25 }
   0x3   :  { %s19_s22 = sshll.u32 %s268_s21, 4  ;;  %s269_s26 = smov 128   ;;  %s20_s22 = int_to_ptr.vmem [resolvable:$true] %s19_s22 }
   0x4   :  { %s270_s27 = smov 8   ;;  %s271_s28 = smov [#allocation6]  }
   0x5   :  { %25 = dma.hbm_to_vmem [thread:$0]  %s18_s20, 1024, %s20_s22, [#allocation5], %s269_s26, %s269_s26, %s270_s27  }
   0x6   :  { %s32_s29 = sshll.u32 %s271_s28, 4  ;;  %s33_s29 = int_to_ptr.vmem [resolvable:$true] %s32_s29 }
   0x7   :  { %38 = dma.hbm_to_vmem [thread:$0]  %s31_s25, 512, %s33_s29, [#allocation7], %s269_s26, %s269_s26, %s270_s27  }
   0x8   :  { %264 = dma.done.wait [#allocation5], 1024  }
   0x9   :  { %265 = vsyncadd [#allocation5], 4294966272 }
   0xa   :  { %266 = dma.done.wait [#allocation7], 512  }
   0xb   :  { %267 = vsyncadd [#allocation7], 4294966784  ;;  %vm57_vm0 = vcmask 261120   ;;  %v272_v0 = vmov -inf   ;;  %v157_v1 = vld [vmem:[#allocation6 + $0x18] sm:$0xff]  ;;  %v156_v2 = vld [vmem:[#allocation6 + $0x10] sm:$0xff] }
   0xc   :  { %58 = vst.msk [vmem:[#allocation2] sm:$0xff] %vm57_vm0, %v272_v0  ;;  %177 = vmatpush.msra.mxu0 %v157_v1  ;;  %v155_v3 = vld [vmem:[#allocation6 + $0x8] sm:$0xff]  ;;  %v60_v4 = vld [vmem:[#allocation4] sm:$0xff]  ;;  %v62_v6 = vld [vmem:[#allocation4 + $0x10] sm:$0xff]  ;;  %vm133_vm1 = vcmask 1041409   ;;  %vm135_vm2 = vcmask 1042434  }
   0xd   :  { %v61_v5 = vld [vmem:[#allocation4 + $0x8] sm:$0xff]  ;;  %v63_v7 = vld [vmem:[#allocation4 + $0x18] sm:$0xff]  ;;  %v69_v8 = vsel %vm57_vm0, %v60_v4, -inf  ;;  %v64_v9 = vld [vmem:[#allocation4 + $0x20] sm:$0xff]  ;;  %v83_v14 = vsel %vm57_vm0, %v62_v6, -inf  ;;  %vm137_vm3 = vcmask 1043459  }
   0xe   :  { %178 = vmatpush.msra.mxu0 %v156_v2  ;;  %v65_v10 = vld [vmem:[#allocation4 + $0x28] sm:$0xff]  ;;  %v66_v11 = vld [vmem:[#allocation4 + $0x30] sm:$0xff]  ;;  %v70_v12 = vrot.slane %v69_v8, 4  ;;  %v76_v13 = vsel %vm57_vm0, %v61_v5, -inf  ;;  %v154_v15 = vld [vmem:[#allocation6] sm:$0xff]  ;;  %v84_v17 = vrot.slane %v83_v14, 4 }
   0xf   :  { %v77_v16 = vrot.slane %v76_v13, 4  ;;  %v90_v18 = vsel %vm57_vm0, %v63_v7, -inf  ;;  %v97_v19 = vsel %vm57_vm0, %v64_v9, -inf  ;;  %v67_v20 = vld [vmem:[#allocation4 + $0x38] sm:$0xff]  ;;  %v104_v24 = vsel %vm57_vm0, %v65_v10, -inf }
  0x10   :  { %179 = vmatpush.msra.mxu0 %v155_v3  ;;  %v71_v21 = vmax.f32 %v69_v8, %v70_v12  ;;  %v91_v22 = vrot.slane %v90_v18, 4  ;;  %v98_v23 = vrot.slane %v97_v19, 4  ;;  %v85_v26 = vmax.f32 %v83_v14, %v84_v17 }
  0x11   :  { %v78_v25 = vmax.f32 %v76_v13, %v77_v16  ;;  %v105_v27 = vrot.slane %v104_v24, 4  ;;  %v111_v28 = vsel %vm57_vm0, %v66_v11, -inf  ;;  %v118_v36 = vsel %vm57_vm0, %v67_v20, -inf }
  0x12   :  { %180 = vmatpush.msra.mxu0 %v154_v15  ;;  %v72_v29 = vrot.slane %v71_v21, 2  ;;  %v92_v30 = vmax.f32 %v90_v18, %v91_v22  ;;  %v99_v31 = vmax.f32 %v97_v19, %v98_v23  ;;  %v112_v32 = vrot.slane %v111_v28, 4  ;;  %v212_v15 = vld [vmem:[%s337_s2] ss:$0 sm:$0xff] }
  0x13   :  { %v79_v33 = vrot.slane %v78_v25, 2  ;;  %v86_v34 = vrot.slane %v85_v26, 2  ;;  %v106_v35 = vmax.f32 %v104_v24, %v105_v27  ;;  %v119_v44 = vrot.slane %v118_v36, 4  ;;  %v59_v8 = vld [vmem:[#allocation2] sm:$0xff] }
  0x14   :  { %v73_v37 = vmax.f32 %v71_v21, %v72_v29  ;;  %v93_v38 = vrot.slane %v92_v30, 2  ;;  %v100_v39 = vrot.slane %v99_v31, 2  ;;  %v113_v40 = vmax.f32 %v111_v28, %v112_v32  ;;  %v213_v18 = vld [vmem:[%s338_s3] ss:$0 sm:$0xff] }
  0x15   :  { %v80_v41 = vmax.f32 %v78_v25, %v79_v33  ;;  %v87_v42 = vmax.f32 %v85_v26, %v86_v34  ;;  %v107_v43 = vrot.slane %v106_v35, 2  ;;  %v120_v52 = vmax.f32 %v118_v36, %v119_v44 }
  0x16   :  { %v74_v45 = vrot.slane %v73_v37, 1  ;;  %v94_v46 = vmax.f32 %v92_v30, %v93_v38  ;;  %v101_v47 = vmax.f32 %v99_v31, %v100_v39  ;;  %v114_v48 = vrot.slane %v113_v40, 2 }
  0x17   :  { %v81_v49 = vrot.slane %v80_v41, 1  ;;  %v88_v50 = vrot.slane %v87_v42, 1  ;;  %v108_v51 = vmax.f32 %v106_v35, %v107_v43  ;;  %v121_v60 = vrot.slane %v120_v52, 2 }
  0x18   :  { %v75_v53 = vmax.f32 %v73_v37, %v74_v45  ;;  %v95_v54 = vrot.slane %v94_v46, 1  ;;  %v102_v55 = vrot.slane %v101_v47, 1  ;;  %v115_v56 = vmax.f32 %v113_v40, %v114_v48 }
  0x19   :  { %v82_v57 = vmax.f32 %v80_v41, %v81_v49  ;;  %v89_v58 = vmax.f32 %v87_v42, %v88_v50  ;;  %v109_v59 = vrot.slane %v108_v51, 1  ;;  %v122_v1 = vmax.f32 %v120_v52, %v121_v60 }
  0x1a   :  { %v96_v61 = vmax.f32 %v94_v46, %v95_v54  ;;  %v103_v62 = vmax.f32 %v101_v47, %v102_v55  ;;  %v116_v63 = vrot.slane %v115_v56, 1  ;;  %vm139_vm4 = vcmask 1044484  }
  0x1b   :  { %v110_v0 = vmax.f32 %v108_v51, %v109_v59  ;;  %v134_v2 = vsel %vm133_vm1, %v82_v57, %v75_v53  ;;  %vm141_vm5 = vcmask 1045509   ;;  %v123_v5 = vrot.slane %v122_v1, 1 }
  0x1c   :  { %v117_v3 = vmax.f32 %v115_v56, %v116_v63  ;;  %v136_v4 = vsel %vm135_vm2, %v89_v58, %v134_v2  ;;  %vm143_vm6 = vcmask 1046534   ;;  %vm145_vm7 = vcmask 1047559  }
  0x1d   :  { %v138_v6 = vsel %vm137_vm3, %v96_v61, %v136_v4  ;;  %v124_v9 = vmax.f32 %v122_v1, %v123_v5  ;;  %v195_v22 = vstv %s339_s4  ;;  %vm198_vm8 = vcmask 7168  }
  0x1e   :  { %v140_v7 = vsel %vm139_vm4, %v103_v62, %v138_v6 }
  0x1f   :  { %v142_v10 = vsel %vm141_vm5, %v110_v0, %v140_v7 }
  0x20   :  { %v144_v11 = vsel %vm143_vm6, %v117_v3, %v142_v10 }
  0x21   :  { %v146_v12 = vsel %vm145_vm7, %v124_v9, %v144_v11 }
  0x22   :  { %v148_v13 = vmax.f32 %v59_v8, %v146_v12 }
  0x24   :  { %149 = vst.msk [vmem:[#allocation2] sm:$0xff] %vm57_vm0, %v148_v13 }
  0x2b   :  { %v153_v14 = vld [vmem:[#allocation2] sm:$0xff] }
  0x2c   :  { %206 = vmatmul.msk.f32.vlgmr.msra.gmra.mxu0 %vm57_vm0, %v153_v14 }
  0xa9   :  { %v182_v16 = vpop.f32.mrf.mxu0 }
  0xaa   :  { %v183_v17 = vadd.f32 %v212_v15, %v182_v16 }
  0xac   :  { %v185_v19 = vmax.f32 %v183_v17, 0.0 }
  0xae   :  { %v190_v20 = vmul.f32 %v213_v18, %v185_v19 }
  0xb0   :  { %v191_v21 = vsel %vm57_vm0, %v190_v20, 0.0 }
  0xb1   :  { %192 = vadd.xlane.f32.xlu0 %v191_v21 }
 0x124   :  { %v193_v23 = vpop.xlane.xlu0 %192 }
 0x125   :  { %v196_v24 = vadd.f32 %v195_v22, %v193_v23 }
 0x127   :  { %214 = vtanh.f32 %v196_v24 }
 0x12d   :  { %v215_v25 = vpop.eup %214 }
 0x12e   :  { %199 = vst.msk [vmem:[%s340_s5] sm:$0xff] %vm198_vm8, %v215_v25 }
 0x12f   :  { %204 = vsyncpa [#allocation5], 1 }
 0x130   :  { %205 = vsyncpa [#allocation7], 1 }

</bundles_post_ra>
